<compile_context>
chip_gen: v7x
topology: tpu7x:2x2x1
jax: 0.10.0
libtpu: 0.0.40
codegen_flags: <defaults>
</compile_context>

<pallas_src>
import functools

import jax
import jax.numpy as jnp
from jax.experimental import pallas as pl
from jax.experimental.pallas import tpu as pltpu


def _round_up(x, m):
    return ((x + m - 1) // m) * m


def _choose_dst_tile(n):
    """Destination-row tile: largest of (256,128,64,32,16) that still yields a
    grid of >= 2 steps, so the 'parallel' axis can shard across TensorCores."""
    for t in (256, 128, 64, 32, 16):
        if pl.cdiv(n, t) >= 2:
            return t
    return 16


def _choose_src_chunk(n, max_chunk=512):
    """Source-node chunk (lane axis of the mask): multiple of 128 lanes."""
    n_pad = _round_up(n, 128)
    return n_pad if n_pad <= max_chunk else max_chunk


def gat_attn_kernel(a_dst_ref, a_src_ref, mask_ref, hfeat_ref, b_ref, o_ref,
                    m_ref, l_ref, acc_ref, *, heads, out_per_head, apply_relu):
    """Edge softmax + aggregation for one (dst tile, src chunk) grid step.

    a_dst_ref : [T, H]     f32   destination attention term
    a_src_ref : [H, S]     f32   source attention term (lane-dense in S)
    mask_ref  : [T, S]     bf16  additive mask: 0 where edge exists, -1e30 else
    hfeat_ref : [H, S, F]  bf16  head-major transformed source features
    b_ref     : [1, H*F]   f32   bias
    o_ref     : [T, H*F]         output (written on the last source chunk)
    m/l/acc   : VMEM scratch — online-softmax running max / sum / accumulator
    """
    f32 = jnp.float32
    bf16 = jnp.bfloat16
    j = pl.program_id(1)

    @pl.when(j == 0)
    def _():
        m_ref[...] = jnp.full_like(m_ref, -jnp.inf)
        l_ref[...] = jnp.zeros_like(l_ref)
        acc_ref[...] = jnp.zeros_like(acc_ref)

    mask = mask_ref[...].astype(f32)                              # [T, S], shared by all heads

    for h in range(heads):                                        # heads is small & static
        # e[i, j] = LeakyReLU(a_dst[i] + a_src[j]) + mask[i, j]
        e = a_dst_ref[:, h:h + 1] + a_src_ref[h:h + 1, :]         # [T, S] (sublane broadcast)
        e = jnp.where(e > 0, e, f32(0.2) * e)                     # leaky_relu(0.2)
        e = e + mask

        m_prev = m_ref[h]                                         # [T, 1]
        m_new = jnp.maximum(m_prev, jnp.max(e, axis=-1, keepdims=True))
        corr = jnp.exp(m_prev - m_new)                            # online-softmax rescale
        p = jnp.exp(e - m_new)                                    # masked entries -> exactly 0
        l_ref[h] = corr * l_ref[h] + jnp.sum(p, axis=-1, keepdims=True)
        m_ref[h] = m_new
        # aggregate this chunk's messages (MXU, bf16 in / f32 acc)
        acc_ref[h] = corr * acc_ref[h] + jnp.dot(
            p.astype(bf16), hfeat_ref[h], preferred_element_type=f32)

    @pl.when(j == pl.num_programs(1) - 1)
    def _():
        outs = []
        for h in range(heads):
            inv = pl.reciprocal(l_ref[h], approx=True)            # EUP vrcp (nearly free)
            outs.append(acc_ref[h] * inv)
        out = outs[0] if heads == 1 else jnp.concatenate(outs, axis=-1)
        out = out + b_ref[...].astype(f32)
        if apply_relu:
            out = jnp.maximum(out, f32(0.0))
        o_ref[...] = out.astype(o_ref.dtype)                      # single lane-dense store


def gat_layer(x_bf, w_bf, a_src, a_dst, bias, mask_pad, *, heads, out_per_head,
              apply_relu, out_dtype, dst_tile, src_chunk):
    """One GATConv layer: hoisted XLA projections + tiled Pallas edge softmax."""
    n = x_bf.shape[0]
    hf = heads * out_per_head
    n_pad_dst, n_pad_src = mask_pad.shape

    # ---- hoisted projections (computed once per layer, not per tile) ----
    hfeat = jnp.dot(x_bf, w_bf, preferred_element_type=jnp.float32)    # [N, H*F] f32
    hfeat3 = hfeat.reshape(n, heads, out_per_head)
    a_src_t = jnp.einsum('nhf,hf->hn', hfeat3, a_src)                  # [H, N] lane-dense in N
    a_dst_n = jnp.einsum('nhf,hf->nh', hfeat3, a_dst)                  # [N, H]
    hfeat_hm = jnp.transpose(hfeat3, (1, 0, 2)).astype(jnp.bfloat16)   # [H, N, F] bf16

    # ---- pad to the kernel grid (padded entries are killed by mask_pad) ----
    a_dst_p = jnp.pad(a_dst_n, ((0, n_pad_dst - n), (0, 0)))
    a_src_p = jnp.pad(a_src_t, ((0, 0), (0, n_pad_src - n)))
    hfeat_p = jnp.pad(hfeat_hm, ((0, 0), (0, n_pad_src - n), (0, 0)))

    kernel = functools.partial(gat_attn_kernel, heads=heads,
                               out_per_head=out_per_head, apply_relu=apply_relu)
    out = pl.pallas_call(
        kernel,
        out_shape=jax.ShapeDtypeStruct((n_pad_dst, hf), out_dtype),
        grid=(n_pad_dst // dst_tile, n_pad_src // src_chunk),
        in_specs=[
            pl.BlockSpec((dst_tile, heads), lambda i, j: (i, 0)),                   # a_dst
            pl.BlockSpec((heads, src_chunk), lambda i, j: (0, j)),                  # a_src (lane-dense)
            pl.BlockSpec((dst_tile, src_chunk), lambda i, j: (i, j)),               # mask (bf16)
            pl.BlockSpec((heads, src_chunk, out_per_head), lambda i, j: (0, j, 0)), # hfeat (bf16)
            pl.BlockSpec((1, hf), lambda i, j: (0, 0)),                             # bias
        ],
        out_specs=pl.BlockSpec((dst_tile, hf), lambda i, j: (i, 0)),
        scratch_shapes=[
            pltpu.VMEM((heads, dst_tile, 1), jnp.float32),                          # running max
            pltpu.VMEM((heads, dst_tile, 1), jnp.float32),                          # running sum
            pltpu.VMEM((heads, dst_tile, out_per_head), jnp.float32),               # accumulator
        ],
        compiler_params=pltpu.CompilerParams(
            dimension_semantics=("parallel", "arbitrary"),
            vmem_limit_bytes=48 * 1024 * 1024),
    )(a_dst_p, a_src_p, mask_pad, hfeat_p, bias)
    return out[:n]


def gat_layer_ref(x_bf, w_bf, a_src, a_dst, bias, adj, *, heads, out_per_head,
                  apply_relu, out_dtype):
    """Pure-JAX reference mirroring the kernel's bf16 MXU operand casts."""
    n = x_bf.shape[0]
    hfeat = jnp.dot(x_bf, w_bf, preferred_element_type=jnp.float32)
    hfeat3 = hfeat.reshape(n, heads, out_per_head)
    outs = []
    for h in range(heads):
        hfh = hfeat3[:, h, :]
        a_s = jnp.einsum('nf,f->n', hfh, a_src[h])
        a_d = jnp.einsum('nf,f->n', hfh, a_dst[h])[:, None]
        e = a_d + a_s[None, :]
        e = jnp.where(e > 0, e, 0.2 * e)
        e = jnp.where(adj > 0, e, -1e30)
        e = e - jnp.max(e, axis=-1, keepdims=True)
        p = jnp.exp(e)
        denom = jnp.sum(p, axis=-1, keepdims=True)
        o = jnp.dot(p.astype(jnp.bfloat16), hfh.astype(jnp.bfloat16),
                    preferred_element_type=jnp.float32) / denom
        outs.append(o)
    out = jnp.concatenate(outs, axis=-1) + bias
    if apply_relu:
        out = jnp.maximum(out, 0.0)
    return out.astype(out_dtype)


class GATPallas:
    """Mirror of the PyTorch GAT module (stack of GATConv layers, concat heads)."""

    def __init__(self, key, in_channels, hidden_channels, out_channels, num_layers, heads=1):
        self.layers = []
        dims = [(in_channels, hidden_channels, heads)]
        for _ in range(num_layers - 2):
            dims.append((hidden_channels * heads, hidden_channels, heads))
        dims.append((hidden_channels * heads, out_channels, 1))
        for (cin, cout, h) in dims:
            key, k_w, k_as, k_ad, k_b = jax.random.split(key, 5)
            scale = 1.0 / jnp.sqrt(jnp.float32(cin))
            w = jax.random.normal(k_w, (cin, h * cout), jnp.float32) * scale
            self.layers.append(dict(
                w_bf=w.astype(jnp.bfloat16),          # weights pre-cast to bf16 in HBM
                a_src=jax.random.normal(k_as, (h, cout), jnp.float32) * 0.1,
                a_dst=jax.random.normal(k_ad, (h, cout), jnp.float32) * 0.1,
                bias=jax.random.normal(k_b, (1, h * cout), jnp.float32) * 0.01,
                heads=h, out_per_head=cout))

    def __call__(self, x, mask_pad, adj, *, dst_tile, src_chunk, use_kernel=True):
        x = x.astype(jnp.bfloat16)                    # bf16 activations between layers
        n_layers = len(self.layers)
        for i, p in enumerate(self.layers):
            last = i == n_layers - 1
            apply_relu = not last                     # F.relu on all but the last layer
            out_dtype = jnp.float32 if last else jnp.bfloat16
            if use_kernel:
                x = gat_layer(x, p["w_bf"], p["a_src"], p["a_dst"], p["bias"], mask_pad,
                              heads=p["heads"], out_per_head=p["out_per_head"],
                              apply_relu=apply_relu, out_dtype=out_dtype,
                              dst_tile=dst_tile, src_chunk=src_chunk)
            else:
                x = gat_layer_ref(x, p["w_bf"], p["a_src"], p["a_dst"], p["bias"], adj,
                                  heads=p["heads"], out_per_head=p["out_per_head"],
                                  apply_relu=apply_relu, out_dtype=out_dtype)
        return x


if __name__ == "__main__":
    key = jax.random.PRNGKey(0)
    N = 32                 # number of graph nodes
    in_channels = 8
    hidden_channels = 16
    out_channels = 4
    num_layers = 3
    heads = 2
    num_edges = 96

    k_x, k_src, k_dst, k_model = jax.random.split(key, 4)
    x = jax.random.normal(k_x, (N, in_channels), jnp.float32)

    # deterministic synthetic edge_index (the original loads it from disk)
    src = jax.random.randint(k_src, (num_edges,), 0, N)
    dst = jax.random.randint(k_dst, (num_edges,), 0, N)
    adj = jnp.zeros((N, N), jnp.float32).at[dst, src].set(1.0)
    adj = adj.at[jnp.arange(N), jnp.arange(N)].set(1.0)   # add_self_loops=True (PyG default)

    # padding-aware tile choice + additive bf16 softmax mask, built once
    dst_tile = _choose_dst_tile(N)
    src_chunk = _choose_src_chunk(N)
    n_pad_dst = _round_up(N, dst_tile)
    n_pad_src = _round_up(N, src_chunk)
    mask = jnp.where(adj > 0, jnp.float32(0.0), jnp.float32(-1e30))
    mask_pad = jnp.full((n_pad_dst, n_pad_src), -1e30, jnp.float32)
    mask_pad = mask_pad.at[:N, :N].set(mask).astype(jnp.bfloat16)

    model = GATPallas(k_model, in_channels, hidden_channels, out_channels,
                      num_layers, heads=heads)

    out = model(x, mask_pad, adj, dst_tile=dst_tile, src_chunk=src_chunk, use_kernel=True)
    out = jax.block_until_ready(out)

    ref = model(x, mask_pad, adj, dst_tile=dst_tile, src_chunk=src_chunk, use_kernel=False)
    assert out.shape == (N, out_channels), out.shape
    assert bool(jnp.all(jnp.isfinite(out)))
    # bf16 MXU operands + bf16 inter-layer activations + approx reciprocal
    assert bool(jnp.allclose(out, ref, atol=3e-2, rtol=3e-2)), "mismatch vs JAX reference"
    print("KERNEL_OK")
</pallas_src>

<mosaic_0001>
module attributes {stable_mosaic.version = 11 : i64} {
  func.func @gat_attn_kernel(%arg0: i32, %arg1: i32, %arg2: memref<16x2xf32, #tpu.memory_space<vmem>>, %arg3: memref<2x128xf32, #tpu.memory_space<vmem>>, %arg4: memref<16x128xbf16, #tpu.memory_space<vmem>>, %arg5: memref<2x128x16xbf16, #tpu.memory_space<vmem>>, %arg6: memref<1x32xf32, #tpu.memory_space<vmem>>, %arg7: memref<16x32xbf16, #tpu.memory_space<vmem>>, %arg8: memref<2x16x1xf32, #tpu.memory_space<vmem>>, %arg9: memref<2x16x1xf32, #tpu.memory_space<vmem>>, %arg10: memref<2x16x16xf32, #tpu.memory_space<vmem>>) attributes {dimension_semantics = [#tpu.dimension_semantics<parallel>, #tpu.dimension_semantics<arbitrary>], iteration_bounds = array<i64: 2, 1>, scalar_prefetch = 0 : i64, scratch_operands = 3 : i64, tpu.core_type = #tpu.core_type<tc>, window_params = [{transform_indices = @transform_0, window_bounds = array<i64: 16, 2>}, {transform_indices = @transform_1, window_bounds = array<i64: 2, 128>}, {transform_indices = @transform_2, window_bounds = array<i64: 16, 128>}, {transform_indices = @transform_3, window_bounds = array<i64: 2, 128, 16>}, {pipeline_mode = #tpu.pipeline_mode<synchronous>, transform_indices = @transform_4, window_bounds = array<i64: 1, 32>}, {transform_indices = @transform_5, window_bounds = array<i64: 16, 32>}]} {
    %c0_i32 = arith.constant 0 : i32
    %0 = arith.cmpi eq, %arg1, %c0_i32 : i32
    %1 = arith.extui %0 : i1 to i32
    %c0_i32_0 = arith.constant 0 : i32
    %2 = arith.cmpi ne, %1, %c0_i32_0 : i32
    scf.if %2 {
      %cst_62 = arith.constant 0xFF800000 : f32
      %98 = vector.broadcast %cst_62 : f32 to vector<2x16x1xf32>
      %c0_63 = arith.constant 0 : index
      %c0_64 = arith.constant 0 : index
      %c0_65 = arith.constant 0 : index
      %99 = vector.load %arg8[%c0_63, %c0_64, %c0_65] : memref<2x16x1xf32, #tpu.memory_space<vmem>>, vector<2x16x1xf32>
      tpu.vector_store %arg8[%c0_63, %c0_64, %c0_65], %98 {strides = array<i32>} : memref<2x16x1xf32, #tpu.memory_space<vmem>>, vector<2x16x1xf32>,
      %cst_66 = arith.constant 0.000000e+00 : f32
      %100 = vector.broadcast %cst_66 : f32 to vector<2x16x1xf32>
      %c0_67 = arith.constant 0 : index
      %c0_68 = arith.constant 0 : index
      %c0_69 = arith.constant 0 : index
      %101 = vector.load %arg9[%c0_67, %c0_68, %c0_69] : memref<2x16x1xf32, #tpu.memory_space<vmem>>, vector<2x16x1xf32>
      tpu.vector_store %arg9[%c0_67, %c0_68, %c0_69], %100 {strides = array<i32>} : memref<2x16x1xf32, #tpu.memory_space<vmem>>, vector<2x16x1xf32>,
      %cst_70 = arith.constant 0.000000e+00 : f32
      %102 = vector.broadcast %cst_70 : f32 to vector<2x16x16xf32>
      %c0_71 = arith.constant 0 : index
      %c0_72 = arith.constant 0 : index
      %c0_73 = arith.constant 0 : index
      %103 = vector.load %arg10[%c0_71, %c0_72, %c0_73] : memref<2x16x16xf32, #tpu.memory_space<vmem>>, vector<2x16x16xf32>
      tpu.vector_store %arg10[%c0_71, %c0_72, %c0_73], %102 {strides = array<i32>} : memref<2x16x16xf32, #tpu.memory_space<vmem>>, vector<2x16x16xf32>,
    } else {
    }
    %c0 = arith.constant 0 : index
    %c0_1 = arith.constant 0 : index
    %3 = vector.load %arg4[%c0, %c0_1] : memref<16x128xbf16, #tpu.memory_space<vmem>>, vector<16x128xbf16>
    %4 = arith.extf %3 : vector<16x128xbf16> to vector<16x128xf32>
    %c0_2 = arith.constant 0 : index
    %c0_3 = arith.constant 0 : index
    %5 = vector.load %arg2[%c0_2, %c0_3] : memref<16x2xf32, #tpu.memory_space<vmem>>, vector<16x1xf32>
    %c0_4 = arith.constant 0 : index
    %c0_5 = arith.constant 0 : index
    %6 = vector.load %arg3[%c0_4, %c0_5] : memref<2x128xf32, #tpu.memory_space<vmem>>, vector<1x128xf32>
    %7 = vector.broadcast %5 : vector<16x1xf32> to vector<16x128xf32>
    %8 = vector.broadcast %6 : vector<1x128xf32> to vector<16x128xf32>
    %9 = arith.addf %7, %8 : vector<16x128xf32>
    %cst = arith.constant 0.000000e+00 : f32
    %10 = vector.broadcast %cst : f32 to vector<16x128xf32>
    %11 = arith.cmpf ogt, %9, %10 : vector<16x128xf32>
    %cst_6 = arith.constant 2.000000e-01 : f32
    %12 = vector.broadcast %cst_6 : f32 to vector<16x128xf32>
    %13 = arith.mulf %12, %9 : vector<16x128xf32>
    %14 = arith.select %11, %9, %13 : vector<16x128xi1>, vector<16x128xf32>
    %15 = arith.addf %14, %4 : vector<16x128xf32>
    %c0_7 = arith.constant 0 : index
    %c0_8 = arith.constant 0 : index
    %c0_9 = arith.constant 0 : index
    %16 = vector.load %arg8[%c0_7, %c0_8, %c0_9] : memref<2x16x1xf32, #tpu.memory_space<vmem>>, vector<1x16x1xf32>
    %17 = vector.shape_cast %16 : vector<1x16x1xf32> to vector<16x1xf32>
    %cst_10 = arith.constant dense<0xFF800000> : vector<16xf32>
    %18 = vector.multi_reduction <maximumf>, %15, %cst_10 [1] : vector<16x128xf32> to vector<16xf32>
    %19 = vector.shape_cast %18 : vector<16xf32> to vector<16x1xf32>
    %20 = arith.maximumf %17, %19 : vector<16x1xf32>
    %21 = arith.subf %17, %20 : vector<16x1xf32>
    %22 = math.exp %21 : vector<16x1xf32>
    %23 = vector.broadcast %20 : vector<16x1xf32> to vector<16x128xf32>
    %24 = arith.subf %15, %23 : vector<16x128xf32>
    %25 = math.exp %24 : vector<16x128xf32>
    %c0_11 = arith.constant 0 : index
    %c0_12 = arith.constant 0 : index
    %c0_13 = arith.constant 0 : index
    %26 = vector.load %arg9[%c0_11, %c0_12, %c0_13] : memref<2x16x1xf32, #tpu.memory_space<vmem>>, vector<1x16x1xf32>
    %27 = vector.shape_cast %26 : vector<1x16x1xf32> to vector<16x1xf32>
    %28 = arith.mulf %22, %27 : vector<16x1xf32>
    %cst_14 = arith.constant dense<0.000000e+00> : vector<16xf32>
    %29 = vector.multi_reduction <add>, %25, %cst_14 [1] : vector<16x128xf32> to vector<16xf32>
    %30 = vector.shape_cast %29 : vector<16xf32> to vector<16x1xf32>
    %31 = arith.addf %28, %30 : vector<16x1xf32>
    %c0_15 = arith.constant 0 : index
    %c0_16 = arith.constant 0 : index
    %c0_17 = arith.constant 0 : index
    %32 = vector.load %arg9[%c0_15, %c0_16, %c0_17] : memref<2x16x1xf32, #tpu.memory_space<vmem>>, vector<1x16x1xf32>
    %33 = vector.shape_cast %32 : vector<1x16x1xf32> to vector<16x1xf32>
    %34 = vector.shape_cast %31 : vector<16x1xf32> to vector<1x16x1xf32>
    tpu.vector_store %arg9[%c0_15, %c0_16, %c0_17], %34 {strides = array<i32>} : memref<2x16x1xf32, #tpu.memory_space<vmem>>, vector<1x16x1xf32>,
    %c0_18 = arith.constant 0 : index
    %c0_19 = arith.constant 0 : index
    %c0_20 = arith.constant 0 : index
    %35 = vector.load %arg8[%c0_18, %c0_19, %c0_20] : memref<2x16x1xf32, #tpu.memory_space<vmem>>, vector<1x16x1xf32>
    %36 = vector.shape_cast %35 : vector<1x16x1xf32> to vector<16x1xf32>
    %37 = vector.shape_cast %20 : vector<16x1xf32> to vector<1x16x1xf32>
    tpu.vector_store %arg8[%c0_18, %c0_19, %c0_20], %37 {strides = array<i32>} : memref<2x16x1xf32, #tpu.memory_space<vmem>>, vector<1x16x1xf32>,
    %c0_21 = arith.constant 0 : index
    %c0_22 = arith.constant 0 : index
    %c0_23 = arith.constant 0 : index
    %38 = vector.load %arg10[%c0_21, %c0_22, %c0_23] : memref<2x16x16xf32, #tpu.memory_space<vmem>>, vector<1x16x16xf32>
    %39 = vector.shape_cast %38 : vector<1x16x16xf32> to vector<16x16xf32>
    %40 = vector.broadcast %22 : vector<16x1xf32> to vector<16x16xf32>
    %41 = arith.mulf %40, %39 : vector<16x16xf32>
    %42 = arith.truncf %25 : vector<16x128xf32> to vector<16x128xbf16>
    %c0_24 = arith.constant 0 : index
    %c0_25 = arith.constant 0 : index
    %c0_26 = arith.constant 0 : index
    %43 = vector.load %arg5[%c0_24, %c0_25, %c0_26] : memref<2x128x16xbf16, #tpu.memory_space<vmem>>, vector<1x128x16xbf16>
    %44 = vector.shape_cast %43 : vector<1x128x16xbf16> to vector<128x16xbf16>
    %cst_27 = arith.constant dense<0.000000e+00> : vector<16x16xf32>
    %45 = tpu.matmul %42, %44, %cst_27 {dimension_numbers = #tpu.dot_dimension_numbers<[1], [0], [0], [1], [0, 0, 1, 1], [], []>} : vector<16x128xbf16>, vector<128x16xbf16>, vector<16x16xf32> -> vector<16x16xf32>
    %46 = arith.addf %41, %45 : vector<16x16xf32>
    %c0_28 = arith.constant 0 : index
    %c0_29 = arith.constant 0 : index
    %c0_30 = arith.constant 0 : index
    %47 = vector.load %arg10[%c0_28, %c0_29, %c0_30] : memref<2x16x16xf32, #tpu.memory_space<vmem>>, vector<1x16x16xf32>
    %48 = vector.shape_cast %47 : vector<1x16x16xf32> to vector<16x16xf32>
    %49 = vector.shape_cast %46 : vector<16x16xf32> to vector<1x16x16xf32>
    tpu.vector_store %arg10[%c0_28, %c0_29, %c0_30], %49 {strides = array<i32>} : memref<2x16x16xf32, #tpu.memory_space<vmem>>, vector<1x16x16xf32>,
    %c0_31 = arith.constant 0 : index
    %c1 = arith.constant 1 : index
    %50 = vector.load %arg2[%c0_31, %c1] : memref<16x2xf32, #tpu.memory_space<vmem>>, vector<16x1xf32>
    %c1_32 = arith.constant 1 : index
    %c0_33 = arith.constant 0 : index
    %51 = vector.load %arg3[%c1_32, %c0_33] : memref<2x128xf32, #tpu.memory_space<vmem>>, vector<1x128xf32>
    %52 = vector.broadcast %50 : vector<16x1xf32> to vector<16x128xf32>
    %53 = vector.broadcast %51 : vector<1x128xf32> to vector<16x128xf32>
    %54 = arith.addf %52, %53 : vector<16x128xf32>
    %cst_34 = arith.constant 0.000000e+00 : f32
    %55 = vector.broadcast %cst_34 : f32 to vector<16x128xf32>
    %56 = arith.cmpf ogt, %54, %55 : vector<16x128xf32>
    %cst_35 = arith.constant 2.000000e-01 : f32
    %57 = vector.broadcast %cst_35 : f32 to vector<16x128xf32>
    %58 = arith.mulf %57, %54 : vector<16x128xf32>
    %59 = arith.select %56, %54, %58 : vector<16x128xi1>, vector<16x128xf32>
    %60 = arith.addf %59, %4 : vector<16x128xf32>
    %c1_36 = arith.constant 1 : index
    %c0_37 = arith.constant 0 : index
    %c0_38 = arith.constant 0 : index
    %61 = vector.load %arg8[%c1_36, %c0_37, %c0_38] : memref<2x16x1xf32, #tpu.memory_space<vmem>>, vector<1x16x1xf32>
    %62 = vector.shape_cast %61 : vector<1x16x1xf32> to vector<16x1xf32>
    %cst_39 = arith.constant dense<0xFF800000> : vector<16xf32>
    %63 = vector.multi_reduction <maximumf>, %60, %cst_39 [1] : vector<16x128xf32> to vector<16xf32>
    %64 = vector.shape_cast %63 : vector<16xf32> to vector<16x1xf32>
    %65 = arith.maximumf %62, %64 : vector<16x1xf32>
    %66 = arith.subf %62, %65 : vector<16x1xf32>
    %67 = math.exp %66 : vector<16x1xf32>
    %68 = vector.broadcast %65 : vector<16x1xf32> to vector<16x128xf32>
    %69 = arith.subf %60, %68 : vector<16x128xf32>
    %70 = math.exp %69 : vector<16x128xf32>
    %c1_40 = arith.constant 1 : index
    %c0_41 = arith.constant 0 : index
    %c0_42 = arith.constant 0 : index
    %71 = vector.load %arg9[%c1_40, %c0_41, %c0_42] : memref<2x16x1xf32, #tpu.memory_space<vmem>>, vector<1x16x1xf32>
    %72 = vector.shape_cast %71 : vector<1x16x1xf32> to vector<16x1xf32>
    %73 = arith.mulf %67, %72 : vector<16x1xf32>
    %cst_43 = arith.constant dense<0.000000e+00> : vector<16xf32>
    %74 = vector.multi_reduction <add>, %70, %cst_43 [1] : vector<16x128xf32> to vector<16xf32>
    %75 = vector.shape_cast %74 : vector<16xf32> to vector<16x1xf32>
    %76 = arith.addf %73, %75 : vector<16x1xf32>
    %c1_44 = arith.constant 1 : index
    %c0_45 = arith.constant 0 : index
    %c0_46 = arith.constant 0 : index
    %77 = vector.load %arg9[%c1_44, %c0_45, %c0_46] : memref<2x16x1xf32, #tpu.memory_space<vmem>>, vector<1x16x1xf32>
    %78 = vector.shape_cast %77 : vector<1x16x1xf32> to vector<16x1xf32>
    %79 = vector.shape_cast %76 : vector<16x1xf32> to vector<1x16x1xf32>
    tpu.vector_store %arg9[%c1_44, %c0_45, %c0_46], %79 {strides = array<i32>} : memref<2x16x1xf32, #tpu.memory_space<vmem>>, vector<1x16x1xf32>,
    %c1_47 = arith.constant 1 : index
    %c0_48 = arith.constant 0 : index
    %c0_49 = arith.constant 0 : index
    %80 = vector.load %arg8[%c1_47, %c0_48, %c0_49] : memref<2x16x1xf32, #tpu.memory_space<vmem>>, vector<1x16x1xf32>
    %81 = vector.shape_cast %80 : vector<1x16x1xf32> to vector<16x1xf32>
    %82 = vector.shape_cast %65 : vector<16x1xf32> to vector<1x16x1xf32>
    tpu.vector_store %arg8[%c1_47, %c0_48, %c0_49], %82 {strides = array<i32>} : memref<2x16x1xf32, #tpu.memory_space<vmem>>, vector<1x16x1xf32>,
    %c1_50 = arith.constant 1 : index
    %c0_51 = arith.constant 0 : index
    %c0_52 = arith.constant 0 : index
    %83 = vector.load %arg10[%c1_50, %c0_51, %c0_52] : memref<2x16x16xf32, #tpu.memory_space<vmem>>, vector<1x16x16xf32>
    %84 = vector.shape_cast %83 : vector<1x16x16xf32> to vector<16x16xf32>
    %85 = vector.broadcast %67 : vector<16x1xf32> to vector<16x16xf32>
    %86 = arith.mulf %85, %84 : vector<16x16xf32>
    %87 = arith.truncf %70 : vector<16x128xf32> to vector<16x128xbf16>
    %c1_53 = arith.constant 1 : index
    %c0_54 = arith.constant 0 : index
    %c0_55 = arith.constant 0 : index
    %88 = vector.load %arg5[%c1_53, %c0_54, %c0_55] : memref<2x128x16xbf16, #tpu.memory_space<vmem>>, vector<1x128x16xbf16>
    %89 = vector.shape_cast %88 : vector<1x128x16xbf16> to vector<128x16xbf16>
    %cst_56 = arith.constant dense<0.000000e+00> : vector<16x16xf32>
    %90 = tpu.matmul %87, %89, %cst_56 {dimension_numbers = #tpu.dot_dimension_numbers<[1], [0], [0], [1], [0, 0, 1, 1], [], []>} : vector<16x128xbf16>, vector<128x16xbf16>, vector<16x16xf32> -> vector<16x16xf32>
    %91 = arith.addf %86, %90 : vector<16x16xf32>
    %c1_57 = arith.constant 1 : index
    %c0_58 = arith.constant 0 : index
    %c0_59 = arith.constant 0 : index
    %92 = vector.load %arg10[%c1_57, %c0_58, %c0_59] : memref<2x16x16xf32, #tpu.memory_space<vmem>>, vector<1x16x16xf32>
    %93 = vector.shape_cast %92 : vector<1x16x16xf32> to vector<16x16xf32>
    %94 = vector.shape_cast %91 : vector<16x16xf32> to vector<1x16x16xf32>
    tpu.vector_store %arg10[%c1_57, %c0_58, %c0_59], %94 {strides = array<i32>} : memref<2x16x16xf32, #tpu.memory_space<vmem>>, vector<1x16x16xf32>,
    %c0_i32_60 = arith.constant 0 : i32
    %95 = arith.cmpi eq, %arg1, %c0_i32_60 : i32
    %96 = arith.extui %95 : i1 to i32
    %c0_i32_61 = arith.constant 0 : i32
    %97 = arith.cmpi ne, %96, %c0_i32_61 : i32
    scf.if %97 {
      %c0_62 = arith.constant 0 : index
      %c0_63 = arith.constant 0 : index
      %c0_64 = arith.constant 0 : index
      %98 = vector.load %arg9[%c0_62, %c0_63, %c0_64] : memref<2x16x1xf32, #tpu.memory_space<vmem>>, vector<1x16x1xf32>
      %99 = vector.shape_cast %98 : vector<1x16x1xf32> to vector<16x1xf32>
      %100 = tpu.reciprocal %99 {approx = true} : vector<16x1xf32> -> vector<16x1xf32>
      %c0_65 = arith.constant 0 : index
      %c0_66 = arith.constant 0 : index
      %c0_67 = arith.constant 0 : index
      %101 = vector.load %arg10[%c0_65, %c0_66, %c0_67] : memref<2x16x16xf32, #tpu.memory_space<vmem>>, vector<1x16x16xf32>
      %102 = vector.shape_cast %101 : vector<1x16x16xf32> to vector<16x16xf32>
      %103 = vector.broadcast %100 : vector<16x1xf32> to vector<16x16xf32>
      %104 = arith.mulf %102, %103 : vector<16x16xf32>
      %c1_68 = arith.constant 1 : index
      %c0_69 = arith.constant 0 : index
      %c0_70 = arith.constant 0 : index
      %105 = vector.load %arg9[%c1_68, %c0_69, %c0_70] : memref<2x16x1xf32, #tpu.memory_space<vmem>>, vector<1x16x1xf32>
      %106 = vector.shape_cast %105 : vector<1x16x1xf32> to vector<16x1xf32>
      %107 = tpu.reciprocal %106 {approx = true} : vector<16x1xf32> -> vector<16x1xf32>
      %c1_71 = arith.constant 1 : index
      %c0_72 = arith.constant 0 : index
      %c0_73 = arith.constant 0 : index
      %108 = vector.load %arg10[%c1_71, %c0_72, %c0_73] : memref<2x16x16xf32, #tpu.memory_space<vmem>>, vector<1x16x16xf32>
      %109 = vector.shape_cast %108 : vector<1x16x16xf32> to vector<16x16xf32>
      %110 = vector.broadcast %107 : vector<16x1xf32> to vector<16x16xf32>
      %111 = arith.mulf %109, %110 : vector<16x16xf32>
      %112 = tpu.concatenate %104, %111 in 1 : vector<16x16xf32>, vector<16x16xf32> -> vector<16x32xf32>
      %c0_74 = arith.constant 0 : index
      %c0_75 = arith.constant 0 : index
      %113 = vector.load %arg6[%c0_74, %c0_75] : memref<1x32xf32, #tpu.memory_space<vmem>>, vector<1x32xf32>
      %114 = vector.broadcast %113 : vector<1x32xf32> to vector<16x32xf32>
      %115 = arith.addf %112, %114 : vector<16x32xf32>
      %cst_76 = arith.constant 0.000000e+00 : f32
      %116 = vector.broadcast %cst_76 : f32 to vector<16x32xf32>
      %117 = arith.maximumf %115, %116 : vector<16x32xf32>
      %118 = arith.truncf %117 : vector<16x32xf32> to vector<16x32xbf16>
      %c0_77 = arith.constant 0 : index
      %c0_78 = arith.constant 0 : index
      %119 = vector.load %arg7[%c0_77, %c0_78] : memref<16x32xbf16, #tpu.memory_space<vmem>>, vector<16x32xbf16>
      tpu.vector_store %arg7[%c0_77, %c0_78], %118 {strides = array<i32>} : memref<16x32xbf16, #tpu.memory_space<vmem>>, vector<16x32xbf16>,
    } else {
    }
    return
  }
  func.func @transform_0(%arg0: i32, %arg1: i32) -> (i32, i32) {
    %c0_i32 = arith.constant 0 : i32
    %c0_i32_0 = arith.constant 0 : i32
    return %arg0, %c0_i32 : i32, i32
  }
  func.func @transform_1(%arg0: i32, %arg1: i32) -> (i32, i32) {
    %c0_i32 = arith.constant 0 : i32
    %c0_i32_0 = arith.constant 0 : i32
    return %c0_i32, %arg1 : i32, i32
  }
  func.func @transform_2(%arg0: i32, %arg1: i32) -> (i32, i32) {
    %c0_i32 = arith.constant 0 : i32
    return %arg0, %arg1 : i32, i32
  }
  func.func @transform_3(%arg0: i32, %arg1: i32) -> (i32, i32, i32) {
    %c0_i32 = arith.constant 0 : i32
    %c0_i32_0 = arith.constant 0 : i32
    %c0_i32_1 = arith.constant 0 : i32
    return %c0_i32, %arg1, %c0_i32_0 : i32, i32, i32
  }
  func.func @transform_4(%arg0: i32, %arg1: i32) -> (i32, i32) {
    %c0_i32 = arith.constant 0 : i32
    %c0_i32_0 = arith.constant 0 : i32
    %c0_i32_1 = arith.constant 0 : i32
    return %c0_i32, %c0_i32_0 : i32, i32
  }
  func.func @transform_5(%arg0: i32, %arg1: i32) -> (i32, i32) {
    %c0_i32 = arith.constant 0 : i32
    %c0_i32_0 = arith.constant 0 : i32
    return %arg0, %c0_i32 : i32, i32
  }
}

</mosaic_0001>

<bundles_post_ra>
// kernel: tpu_custom_call.1
= control target key start
LH: loop header
LB: loop body
LE: loop exit
PB: predicated region body
PF: predicated region fallthrough
CT: control target
= control target key end

     0   :  { %10 = vsyncpa [#allocation6], 0  ;;  %s1563_s0 = inlined_call_operand.vmem [shape: f32[32,2], index: 0, kind: input, shape index: {}]   ;;  %s1564_s1 = inlined_call_operand.vmem [shape: f32[2,128], index: 1, kind: input, shape index: {}]   ;;  %s1565_s2 = inlined_call_operand.vmem [shape: bf16[32,128], index: 2, kind: input, shape index: {}]   ;;  %s1566_s3 = inlined_call_operand.vmem [shape: bf16[2,128,16], index: 3, kind: input, shape index: {}]   ;;  %s1567_s4 = inlined_call_operand.vmem [shape: f32[1,32], index: 4, kind: input, shape index: {}]   ;;  %s1568_s5 = inlined_call_operand.hbm [shape: bf16[32,32], index: 5, kind: output, shape index: {}]  }
   0x1   :  { %12 = vsyncpa [#allocation6 + $0x1], 0  ;;  %s1273_s18 = smov 0   ;;  %s1275_s19 = smov 0  }
   0x2   :  { %s1277_s20 = smov 0   ;;  %s1279_s21 = smov 0  }
   0x3   :  { %s1281_s22 = smov 0   ;;  %s1283_s23 = smov 0  }
   0x4 LB: > { %s929_s24 = sadd.s32 4294967295, %s1232_s23   ;;  %s930_s25 = sadd.s32 4294967294, %s1232_s23   ;;  %s1232_s23 = sphi %s1283_s23, %s18_s23   ;;  %s1228_s22 = sphi %s1281_s22, %s1575_s22   ;;  %s1224_s21 = sphi %s1279_s21, %s1574_s21   ;;  %s1220_s20 = sphi %s1277_s20, %s1573_s20   ;;  %s1216_s19 = sphi %s1275_s19, %s1572_s19   ;;  %s1212_s18 = sphi %s1273_s18, %s1571_s18  }
   0x5   : > { %s30_s26 = sadd.s32 1, %s1228_s22  ;;  %s164_s27 = sadd.s32 1, %s1220_s20 }
   0x6   : > { %p32_p0 = scmp.ge.s32.totalorder %s30_s26, 2  ;;  %p174_p1 = scmp.ne.s32.totalorder %s1220_s20, %s1216_s19 }
   0x7   : > { %p175_p2 = scmp.eq.s32.totalorder %s929_s24, 1  ;;  %p180_p3 = scmp.ne.s32.totalorder %s1216_s19, %s1212_s18 }
   0x8   : > { %s1577_s26 = smov (%p32_p0, %s30_s26), 0  ;;  %p181_p5 = scmp.eq.s32.totalorder %s930_s25, 1 }
   0x9   : > { %p1313_p4 = por %p175_p2, %p174_p1  ;;  %s161_s29 = ssub.s32 %s1228_s22, %s1577_s26 }
   0xa   : > { %p935_p6 = scmp.ge.s32.totalorder %s1232_s23, 1  ;;  %p162_p7 = scmp.eq.s32.totalorder %s161_s29, 0 }
   0xb   : > { %p1320_p8 = por %p181_p5, %p180_p3  ;;  %p239_p9 = scmp.lt.s32.totalorder %s1232_s23, 3 }
   0xc   : > { %s1326_s6 = scalar_select %p162_p7, %s1220_s20, %s164_s27  }
   0xd   : > { %p240_p10 = pnand %p935_p6, %p239_p9 }
   0xe   : > { %s937_s7 = sshll.u32 (!%p240_p10), %s1224_s21, 1  ;;  %v1234_v0 = vmov (!%p240_p10), 1   ;;  %v1235_v1 = vmov (!%p240_p10), 0   ;;  %vm315_vm0 = vcmask (!%p240_p10), 7168   ;;  %v1236_v4 = vmov (!%p240_p10), -inf   ;;  %v1114_v31 = vld [vmem:[%s1566_s3 + $0x40] sm:$0xff] (!%p240_p10)  }
   0xf   : > { %243 = sbr.rel (%p240_p10) target bundleno = 882 (0x372), region = 40  ;;  %1111 = vset.pattern.permute.xlu0 (!%p240_p10), %v1234_v0  ;;  %p285_p11 = scmp.lt.s32.totalorder (!%p240_p10), %s937_s7, 3  ;;  %1112 = vset.pattern.permute.xlu1 (!%p240_p10), %v1235_v1  ;;  %318 = vst.msk [vmem:[#allocation2 + $0x10] sm:$0xff] (!%p240_p10), %vm315_vm0, %v1236_v4  ;;  %316 = vst.msk [vmem:[#allocation2] sm:$0xff] (!%p240_p10), %vm315_vm0, %v1236_v4  ;;  %v950_v5 = vld [vmem:[%s1564_s1 + $0x1] ss:$0 sm:$0xff] (!%p240_p10) }
  0x10   : > { %317 = vst.msk [vmem:[#allocation2 + $0x8] sm:$0xff] (!%p240_p10), %vm315_vm0, %v1236_v4  ;;  %319 = vst.msk [vmem:[#allocation2 + $0x18] sm:$0xff] (!%p240_p10), %vm315_vm0, %v1236_v4  ;;  %v941_v6 = vld [vmem:[%s1564_s1] ss:$0 sm:$0xff] (!%p240_p10)  ;;  %v1237_v30 = vmov (!%p240_p10), 0.0   ;;  %v1116_v33 = vld [vmem:[%s1566_s3 + $0x48] sm:$0xff] (!%p240_p10)  }
  0x11   : > { %1028 = vmatprep.subr.bf16.mxu1 (!%p240_p10), %v1237_v30  ;;  %320 = vst.msk [vmem:[#allocation3] sm:$0xff] (!%p240_p10), %vm315_vm0, %v1237_v30  ;;  %321 = vst.msk [vmem:[#allocation3 + $0x8] sm:$0xff] (!%p240_p10), %vm315_vm0, %v1237_v30  ;;  %1008 = vmatprep.subr.bf16.mxu0 (!%p240_p10), %v1237_v30  ;;  %v1115_v32 = vld [vmem:[%s1566_s3] sm:$0xff] (!%p240_p10)   ;;  %v1117_v34 = vld [vmem:[%s1566_s3 + $0x8] sm:$0xff] (!%p240_p10)   ;;  %vm1238_vm5 = vmmov (!%p240_p10), 0   ;;  %vm324_vm6 = vcmask (!%p240_p10), 130048  }
  0x12   : > { %322 = vst.msk [vmem:[#allocation3 + $0x10] sm:$0xff] (!%p240_p10), %vm315_vm0, %v1237_v30  ;;  %323 = vst.msk [vmem:[#allocation3 + $0x18] sm:$0xff] (!%p240_p10), %vm315_vm0, %v1237_v30  ;;  %1029 = vmatpush3.bf16.msra.mxu1 (!%p240_p10), %v1114_v31  ;;  %1009 = vmatpush3.bf16.msra.mxu0 (!%p240_p10), %v1115_v32  ;;  %v1118_v35 = vld [vmem:[%s1566_s3 + $0x50] sm:$0xff] (!%p240_p10)   ;;  %v1120_v45 = vld [vmem:[%s1566_s3 + $0x58] sm:$0xff] (!%p240_p10)   ;;  %s281_s10 = sand.u32 (!%p240_p10), 1, %s1216_s19   ;;  %vm797_vm7 = vcmask (!%p240_p10), 257024  }
  0x13   : > { %1030 = vmatprep.subr.bf16.mxu1 (!%p240_p10), %v1237_v30  ;;  %1010 = vmatprep.subr.bf16.mxu0 (!%p240_p10), %v1237_v30  ;;  %v1119_v44 = vld [vmem:[%s1566_s3 + $0x10] sm:$0xff] (!%p240_p10)   ;;  %v1121_v52 = vld [vmem:[%s1566_s3 + $0x18] sm:$0xff] (!%p240_p10)   ;;  %v1122_v53 = vld [vmem:[%s1566_s3 + $0x60] sm:$0xff] (!%p240_p10)   ;;  %327 = vst.msk [vmem:[#allocation4 + $0x10] sm:$0xff] (!%p240_p10), %vm324_vm6, %v1237_v30  ;;  %s1517_s24 = scalar_lea.sflag (!%p240_p10), [#allocation6], %s281_s10 }
  0x14   : > { %v1123_v56 = vld [vmem:[%s1566_s3 + $0x20] sm:$0xff] (!%p240_p10)   ;;  %v1124_v57 = vld [vmem:[%s1566_s3 + $0x68] sm:$0xff] (!%p240_p10)   ;;  %v1126_v59 = vld [vmem:[%s1566_s3 + $0x70] sm:$0xff] (!%p240_p10)   ;;  %1044 = vmatprep.mubr.msk.bf16.mxu1 (!%p240_p10), %vm1238_vm5, %v1237_v30  ;;  %1024 = vmatprep.mubr.msk.bf16.mxu0 (!%p240_p10), %vm1238_vm5, %v1237_v30  ;;  %325 = vst.msk [vmem:[#allocation4] sm:$0xff] (!%p240_p10), %vm324_vm6, %v1237_v30 }
  0x15   : > { %v1125_v58 = vld [vmem:[%s1566_s3 + $0x28] sm:$0xff] (!%p240_p10)   ;;  %v1127_v60 = vld [vmem:[%s1566_s3 + $0x30] sm:$0xff] (!%p240_p10)   ;;  %v1128_v61 = vld [vmem:[%s1566_s3 + $0x78] sm:$0xff] (!%p240_p10)   ;;  %326 = vst.msk [vmem:[#allocation4 + $0x8] sm:$0xff] (!%p240_p10), %vm324_vm6, %v1237_v30 }
  0x16   : > { %s1579_s7 = smov (!%p285_p11, %s937_s7), 3  ;;  %1031 = vmatpush3.bf16.msra.mxu1 %v1116_v33  ;;  %1011 = vmatpush3.bf16.msra.mxu0 %v1117_v34  ;;  %v1387_v36 = vld [vmem:[#allocation2 + $0x10] sm:$0xff]  ;;  %v1392_v39 = vld [vmem:[#allocation2] sm:$0xff]  ;;  %v1129_v62 = vld [vmem:[%s1566_s3 + $0x38] sm:$0xff]   ;;  %328 = vst.msk [vmem:[#allocation4 + $0x18] sm:$0xff] %vm324_vm6, %v1237_v30 }
  0x17   : > { %s938_s8 = sshll.u32 %s1579_s7, 3  ;;  %s940_s12 = sshll.u32 %s1579_s7, 2  ;;  %1032 = vmatprep.subr.bf16.mxu1 %v1237_v30  ;;  %1012 = vmatprep.subr.bf16.mxu0 %v1237_v30  ;;  %v1394_v40 = vld [vmem:[#allocation2 + $0x18] sm:$0xff]  ;;  %v1413_v48 = vld [vmem:[#allocation2 + $0x8] sm:$0xff] }
  0x18   : > { %s288_s11 = scalar_lea.vmem %s1563_s0, %s938_s8  ;;  %s301_s15 = scalar_lea.vmem %s1565_s2, %s940_s12 }
  0x19   : > { %v530_v2 = vld [vmem:[%s288_s11] sm:$0xff]  ;;  %v531_v3 = vld [vmem:[%s288_s11 + $0x8] sm:$0xff]  ;;  %s1239_s7 = smov 16   ;;  %s936_s11 = sshll.u32 %s281_s10, 3 }
  0x1a   : > { %535 = vperm.xlu0 %1111, %v530_v2   ;;  %338 = vperm.xlu1 %1112, %v530_v2   ;;  %v987_v7 = vld [vmem:[%s301_s15] sm:$0xff]   ;;  %s985_s12 = sshll.u32 %s1224_s21, 7  ;;  %s283_s13 = scalar_lea.vmem [#allocation5], %s936_s11 }
  0x1b   : > { %v988_v12 = vunpack.c.l.bf16 %v987_v7  ;;  %v989_v22 = vunpack.c.h.bf16 %v987_v7  ;;  %1033 = vmatpush3.bf16.msra.mxu1 %v1118_v35  ;;  %1013 = vmatpush3.bf16.msra.mxu0 %v1119_v44  ;;  %s814_s14 = sshll.u32 %s283_s13, 4  ;;  %s1513_s17 = scalar_lea.hbm %s1568_s5, %s985_s12  ;;  %s1515_s14 = int_to_ptr.vmem [resolvable:$true] %s814_s14 }
  0x1c   : > { %1034 = vmatprep.subr.bf16.mxu1 %v1237_v30  ;;  %1014 = vmatprep.subr.bf16.mxu0 %v1237_v30  ;;  %s1154_s25 = scalar_lea.vmem %s1515_s14, 128  ;;  %s1240_s21 = smov [#allocation5]  }
  0x1d   : > { %p1155_p12 = scmp.ne.s32.totalorder %s1515_s14, %s1154_s25  ;;  %s1158_s27 = sshll.u32 %s1240_s21, 4  ;;  %s1159_s27 = int_to_ptr.vmem [resolvable:$false] %s1158_s27 }
  0x1e   : > { %540 = vperm.xlu0 %1111, %v531_v3   ;;  %343 = vperm.xlu1 %1112, %v531_v3   ;;  %s1160_s29 = scalar_lea.vmem %s1159_s27, 256  ;;  %p1161_p1 = scmp.lt.s32.totalorder %s1515_s14, %s1159_s27 }
  0x1f   : > { %1035 = vmatpush3.bf16.msra.mxu1 %v1120_v45  ;;  %1015 = vmatpush3.bf16.msra.mxu0 %v1121_v52  ;;  %p1156_p13 = pnand %p1155_p12, %p1313_p4  ;;  %p1162_p2 = scmp.lt.s32.totalorder %s1160_s29, %s1154_s25 }
  0x20   : > { %1036 = vmatprep.subr.bf16.mxu1 %v1237_v30  ;;  %1016 = vmatprep.subr.bf16.mxu0 %v1237_v30 }
  0x21   : > { %p1157_p0 = pneg %p1156_p13  ;;  %p1163_p3 = por %p1162_p2, %p1161_p1 }
  0x22   : > { %1113 = vset.pattern.permute.xlu0 %v1235_v1 }
  0x23   : > { %1037 = vmatpush3.bf16.msra.mxu1 %v1122_v53  ;;  %1017 = vmatpush3.bf16.msra.mxu0 %v1123_v56  ;;  %p1164_p5 = pnand %p1163_p3, %p1157_p0 }
  0x24   : > { %1038 = vmatprep.subr.bf16.mxu1 %v1237_v30  ;;  %1018 = vmatprep.subr.bf16.mxu0 %v1237_v30 }
  0x27   : > { %1039 = vmatpush3.bf16.msra.mxu1 %v1124_v57  ;;  %1019 = vmatpush3.bf16.msra.mxu0 %v1125_v58 }
  0x28   : > { %1040 = vmatprep.subr.bf16.mxu1 %v1237_v30  ;;  %1020 = vmatprep.subr.bf16.mxu0 %v1237_v30 }
  0x2b   : > { %1041 = vmatpush3.bf16.msra.mxu1 %v1126_v59  ;;  %1021 = vmatpush3.bf16.msra.mxu0 %v1127_v60 }
  0x2c   : > { %1042 = vmatprep.subr.bf16.mxu1 %v1237_v30  ;;  %1022 = vmatprep.subr.bf16.mxu0 %v1237_v30 }
  0x2f   : > { %1043 = vmatpush3.bf16.msra.mxu1 %v1128_v61  ;;  %1023 = vmatpush3.bf16.msra.mxu0 %v1129_v62 }
  0x99   : > { %v536_v8 = vpop.permute.xlu0 %535  ;;  %v339_v9 = vpop.permute.xlu1 %338 }
  0x9a   : > { %v547_v10 = vadd.f32 %v950_v5, %v536_v8  ;;  %v350_v11 = vadd.f32 %v941_v6, %v339_v9 }
  0x9c   : > { %v551_v13 = vmul.f32 0.2, %v547_v10  ;;  %v354_v14 = vmul.f32 0.2, %v350_v11  ;;  %vm549_vm1 = vcmp.gt.f32.partialorder %v547_v10, 0.0  ;;  %vm352_vm2 = vcmp.gt.f32.partialorder %v350_v11, 0.0 }
  0x9d   : > { %v541_v15 = vpop.permute.xlu0 %540  ;;  %v344_v16 = vpop.permute.xlu1 %343 }
  0x9e   : > { %v548_v17 = vadd.f32 %v950_v5, %v541_v15  ;;  %v553_v18 = vsel %vm549_vm1, %v547_v10, %v551_v13  ;;  %v351_v19 = vadd.f32 %v941_v6, %v344_v16  ;;  %v356_v20 = vsel %vm352_vm2, %v350_v11, %v354_v14 }
  0x9f   : > { %v1345_v21 = vadd.f32 %v988_v12, %v553_v18  ;;  %v1348_v25 = vadd.f32 %v988_v12, %v356_v20 }
  0xa0   : > { %v552_v23 = vmul.f32 0.2, %v548_v17  ;;  %v355_v24 = vmul.f32 0.2, %v351_v19  ;;  %vm550_vm3 = vcmp.gt.f32.partialorder %v548_v17, 0.0  ;;  %vm353_vm4 = vcmp.gt.f32.partialorder %v351_v19, 0.0 }
  0xa1   : > { %560 = vmax.xlane.f32.xlu0 %v1345_v21 }
  0xa2   : > { %v554_v26 = vsel %vm550_vm3, %v548_v17, %v552_v23  ;;  %v357_v27 = vsel %vm353_vm4, %v351_v19, %v355_v24  ;;  %v590_v24 = vld [vmem:[#allocation3 + $0x18] sm:$0xff] }
  0xa3   : > { %v1350_v28 = vadd.f32 %v989_v22, %v554_v26  ;;  %v1354_v29 = vadd.f32 %v989_v22, %v357_v27 }
  0xa5   : > { %562 = vmax.xlane.f32.xlu1 %v1350_v28  ;;  %362 = vmax.xlane.f32.xlu0 %v1348_v25 }
  0xa9   : > { %364 = vmax.xlane.f32.xlu0 %v1354_v29 }
 0x12e   : > { %v561_v37 = vpop.xlane.xlu0 %560 }
 0x12f   : > { %v1390_v38 = vmax.f32 %v1387_v36, %v561_v37 }
 0x131   : > { %v566_v41 = vsub.f32 %v1387_v36, %v1390_v38  ;;  %601 = vst.msk [vmem:[#allocation2 + $0x10] sm:$0xff] %vm315_vm0, %v1390_v38  ;;  %574 = vperm.xlu1 %1112, %v1390_v38   ;;  %v390_v38 = vld [vmem:[#allocation3] sm:$0xff] }
 0x132   : > { %v363_v42 = vpop.xlane.xlu0 %362  ;;  %v563_v43 = vpop.xlane.xlu1 %562 }
 0x133   : > { %v1408_v46 = vmax.f32 %v1392_v39, %v363_v42  ;;  %v1411_v47 = vmax.f32 %v1394_v40, %v563_v43  ;;  %v568_v12 = vmul.f32 1.442695, %v566_v41  ;;  %v391_v41 = vld [vmem:[#allocation3 + $0x8] sm:$0xff] }
 0x135   : > { %v368_v49 = vsub.f32 %v1392_v39, %v1408_v46  ;;  %403 = vst.msk [vmem:[#allocation2] sm:$0xff] %vm315_vm0, %v1408_v46  ;;  %v567_v50 = vsub.f32 %v1394_v40, %v1411_v47  ;;  %602 = vst.msk [vmem:[#allocation2 + $0x18] sm:$0xff] %vm315_vm0, %v1411_v47  ;;  %376 = vperm.xlu1 %1112, %v1408_v46   ;;  %579 = vperm.xlu0 %1113, %v1411_v47  }
 0x136   : > { %v365_v51 = vpop.xlane.xlu0 %364 }
 0x137   : > { %v1434_v54 = vmax.f32 %v1413_v48, %v365_v51  ;;  %v570_v18 = vmul.f32 1.442695, %v567_v50  ;;  %v370_v31 = vmul.f32 1.442695, %v368_v49  ;;  %v605_v50 = vld [vmem:[#allocation4 + $0x18] sm:$0xff] }
 0x139   : > { %v369_v55 = vsub.f32 %v1413_v48, %v1434_v54  ;;  %404 = vst.msk [vmem:[#allocation2 + $0x8] sm:$0xff] %vm315_vm0, %v1434_v54  ;;  %381 = vperm.xlu1 %1112, %v1434_v54   ;;  %v604_v48 = vld [vmem:[#allocation4 + $0x10] sm:$0xff] }
 0x13b   : > { %v372_v32 = vmul.f32 1.442695, %v369_v55 }
 0x1b0   : > { %v575_v63 = vpop.permute.xlu1 %574 }
 0x1b1   : > { %v582_v0 = vsub.f32 %v1345_v21, %v575_v63  ;;  %v589_v21 = vld [vmem:[#allocation3 + $0x10] sm:$0xff] }
 0x1b3   : > { %v584_v1 = vmul.f32 1.442695, %v582_v0 }
 0x1b4   : > { %v580_v2 = vpop.permute.xlu0 %579  ;;  %v377_v3 = vpop.permute.xlu1 %376 }
 0x1b5   : > { %1130 = vpow2.f32 %v584_v1  ;;  %v583_v4 = vsub.f32 %v1350_v28, %v580_v2  ;;  %v384_v5 = vsub.f32 %v1348_v25, %v377_v3 }
 0x1b7   : > { %v586_v6 = vmul.f32 1.442695, %v583_v4  ;;  %v386_v7 = vmul.f32 1.442695, %v384_v5 }
 0x1b8   : > { %v382_v8 = vpop.permute.xlu1 %381 }
 0x1b9   : > { %1132 = vpow2.f32 %v586_v6  ;;  %v385_v9 = vsub.f32 %v1354_v29, %v382_v8 }
 0x1ba   : > { %1134 = vpow2.f32 %v386_v7  ;;  %v405_v7 = vld [vmem:[#allocation4] sm:$0xff] }
 0x1bb   : > { %v388_v10 = vmul.f32 1.442695, %v385_v9 }
 0x1bd   : > { %1136 = vpow2.f32 %v388_v10  ;;  %v406_v10 = vld [vmem:[#allocation4 + $0x8] sm:$0xff] }
 0x1be   : > { %1138 = vpow2.f32 %v568_v12 }
 0x1bf   : > { %v1131_v11 = vpop.eup %1130  ;;  %1140 = vpow2.f32 %v570_v18  ;;  %v975_v18 = vld [vmem:[%s1567_s4] ss:$0 sm:$0xff] }
 0x1c0   : > { %593 = vadd.xlane.f32.xlu1 %v1131_v11 }
 0x1c3   : > { %v1133_v13 = vpop.eup %1132 }
 0x1c4   : > { %595 = vadd.xlane.f32.xlu0 %v1133_v13  ;;  %v618_v14 = vpack.c.bf16 %v1133_v13, %v1131_v11  ;;  %v1135_v15 = vpop.eup %1134 }
 0x1c6   : > { %1045 = vmatmul.mubr.bf16.vlgmr.msra.gmra.mrb[0].mxu1 %v618_v14 }
 0x1c7   : > { %v1137_v16 = vpop.eup %1136 }
 0x1c8   : > { %v419_v17 = vpack.c.bf16 %v1137_v16, %v1135_v15  ;;  %v1139_v19 = vpop.eup %1138 }
 0x1c9   : > { %v1141_v20 = vpop.eup %1140  ;;  %v591_v22 = vmul.f32 %v1139_v19, %v589_v21 }
 0x1ca   : > { %1025 = vmatmul.mubr.bf16.vlgmr.msra.gmra.mrb[0].mxu0 %v419_v17  ;;  %v592_v26 = vmul.f32 %v1141_v20, %v590_v24 }
 0x1d1   : > { %608 = vperm.xlu1 %1112, %v1139_v19  }
 0x1da   : > { %613 = vperm.xlu0 %1113, %v1141_v20  }
 0x1f5   : > { %394 = vadd.xlane.f32.xlu1 %v1135_v15 }
 0x1f9   : > { %396 = vadd.xlane.f32.xlu1 %v1137_v16 }
 0x24d   : > { %v594_v23 = vpop.xlane.xlu1 %593 }
 0x24e   : > { %v597_v25 = vadd.f32 %v594_v23, %v591_v22 }
 0x250   : > { %599 = vst.msk [vmem:[#allocation3 + $0x10] sm:$0xff] %vm315_vm0, %v597_v25 }
 0x251   : > { %v596_v27 = vpop.xlane.xlu0 %595  ;;  %v609_v37 = vpop.permute.xlu1 %608 }
 0x252   : > { %v598_v28 = vadd.f32 %v596_v27, %v592_v26  ;;  %v616_v52 = vmul.f32 %v609_v37, %v604_v48 }
 0x254   : > { %600 = vst.msk [vmem:[#allocation3 + $0x18] sm:$0xff] %vm315_vm0, %v598_v28 }
 0x257   : > { %v750_v29 = vld [vmem:[#allocation3 + $0x10] sm:$0xff] }
 0x258   : > { %1142 = vrcp.f32 %v750_v29 }
 0x259   : > { %v614_v51 = vpop.permute.xlu0 %613 }
 0x25a   : > { %v617_v54 = vmul.f32 %v614_v51, %v605_v50 }
 0x25b   : > { %v751_v30 = vld [vmem:[#allocation3 + $0x18] sm:$0xff] }
 0x25c   : > { %1144 = vrcp.f32 %v751_v30 }
 0x25d   : > { %1146 = vpow2.f32 %v370_v31 }
 0x25e   : > { %1148 = vpow2.f32 %v372_v32 }
 0x262   : > { %v1143_v33 = vpop.eup %1142 }
 0x263   : > { %758 = vperm.xlu1 %1112, %v1143_v33  }
 0x266   : > { %v1145_v34 = vpop.eup %1144 }
 0x267   : > { %763 = vperm.xlu1 %1112, %v1145_v34   ;;  %v1147_v35 = vpop.eup %1146 }
 0x268   : > { %v1149_v36 = vpop.eup %1148  ;;  %v392_v40 = vmul.f32 %v1147_v35, %v390_v38 }
 0x269   : > { %v393_v43 = vmul.f32 %v1149_v36, %v391_v41 }
 0x26b   : > { %409 = vperm.xlu1 %1112, %v1147_v35  }
 0x26f   : > { %414 = vperm.xlu1 %1112, %v1149_v36  }
 0x282   : > { %v395_v39 = vpop.xlane.xlu1 %394 }
 0x283   : > { %v398_v42 = vadd.f32 %v395_v39, %v392_v40 }
 0x285   : > { %401 = vst.msk [vmem:[#allocation3] sm:$0xff] %vm315_vm0, %v398_v42 }
 0x286   : > { %v397_v44 = vpop.xlane.xlu1 %396 }
 0x287   : > { %v399_v45 = vadd.f32 %v397_v44, %v393_v43 }
 0x289   : > { %402 = vst.msk [vmem:[#allocation3 + $0x8] sm:$0xff] %vm315_vm0, %v399_v45 }
 0x28c   : > { %v732_v46 = vld [vmem:[#allocation3] sm:$0xff] }
 0x28d   : > { %1150 = vrcp.f32 %v732_v46 }
 0x290   : > { %v733_v47 = vld [vmem:[#allocation3 + $0x8] sm:$0xff] }
 0x291   : > { %1152 = vrcp.f32 %v733_v47 }
 0x297   : > { %v1151_v49 = vpop.eup %1150 }
 0x298   : > { %740 = vperm.xlu0 %1113, %v1151_v49  }
 0x299   : > { %v718_v53 = vpop.f32.mrb[0].mxu1 }
 0x29a   : > { %v725_v55 = vadd.f32 %v718_v53, %v616_v52  ;;  %v1046_v56 = vpop.f32.mrb[1].mxu1 }
 0x29b   : > { %v1153_v57 = vpop.eup %1152  ;;  %v721_v58 = vpop.f32.mrb[2].mxu1 }
 0x29c   : > { %727 = vst.msk [vmem:[#allocation4 + $0x10] sm:$0xff] %vm324_vm6, %v725_v55  ;;  %v726_v59 = vadd.f32 %v721_v58, %v617_v54  ;;  %v1047_v60 = vpop.f32.mrb[3].mxu1  ;;  %745 = vperm.xlu1 %1112, %v1153_v57  }
 0x29d   : > { %v518_v61 = vpop.f32.mrb[0].mxu0 }
 0x29e   : > { %728 = vst.msk [vmem:[#allocation4 + $0x18] sm:$0xff] %vm324_vm6, %v726_v59  ;;  %v1026_v62 = vpop.f32.mrb[1].mxu0 }
 0x29f   : > { %v521_v63 = vpop.f32.mrb[2].mxu0 }
 0x2a0   : > { %v1027_v0 = vpop.f32.mrb[3].mxu0 }
 0x2a3   : > { %v754_v1 = vld [vmem:[#allocation4 + $0x10] sm:$0xff] }
 0x2a5   : > { %v755_v4 = vld [vmem:[#allocation4 + $0x18] sm:$0xff] }
 0x2e2   : > { %v759_v2 = vpop.permute.xlu1 %758 }
 0x2e3   : > { %v766_v3 = vmul.f32 %v759_v2, %v754_v1 }
 0x2e5   : > { %770 = vrot.lane.b32.xlu0 %v766_v3, %s1239_s7 }
 0x2e6   : > { %v764_v5 = vpop.permute.xlu1 %763 }
 0x2e7   : > { %v767_v6 = vmul.f32 %v764_v5, %v755_v4 }
 0x2e9   : > { %772 = vrot.lane.b32.xlu1 %v767_v6, %s1239_s7 }
 0x2ea   : > { %v410_v8 = vpop.permute.xlu1 %409 }
 0x2eb   : > { %v417_v9 = vmul.f32 %v410_v8, %v405_v7 }
 0x2ed   : > { %v525_v11 = vadd.f32 %v518_v61, %v417_v9 }
 0x2ee   : > { %v415_v12 = vpop.permute.xlu1 %414 }
 0x2ef   : > { %528 = vst.msk [vmem:[#allocation4] sm:$0xff] %vm324_vm6, %v525_v11  ;;  %v418_v13 = vmul.f32 %v415_v12, %v406_v10 }
 0x2f1   : > { %v526_v14 = vadd.f32 %v521_v63, %v418_v13 }
 0x2f3   : > { %529 = vst.msk [vmem:[#allocation4 + $0x8] sm:$0xff] %vm324_vm6, %v526_v14 }
 0x2f6   : > { %v736_v16 = vld [vmem:[#allocation4] sm:$0xff] }
 0x2fa   : > { %v737_v22 = vld [vmem:[#allocation4 + $0x8] sm:$0xff] }
 0x317   : > { %v741_v15 = vpop.permute.xlu0 %740 }
 0x318   : > { %v748_v17 = vmul.f32 %v741_v15, %v736_v16 }
 0x31b   : > { %v746_v19 = vpop.permute.xlu1 %745 }
 0x31c   : > { %v749_v24 = vmul.f32 %v746_v19, %v737_v22 }
 0x357   : > { %v771_v20 = vpop.permute.xlu0 %770 }
 0x358   : > { %v776_v21 = vsel %vm324_vm6, %v748_v17, %v771_v20 }
 0x359   : > { %v785_v23 = vadd.f32 %v975_v18, %v776_v21 }
 0x35b   : > { %v787_v25 = vmax.f32 %v785_v23, 0.0  ;;  %v773_v26 = vpop.permute.xlu1 %772 }
 0x35c   : > { %v777_v27 = vsel %vm324_vm6, %v749_v24, %v773_v26 }
 0x35d   : > { %v983_v28 = vpack.c.bf16 %v787_v25, %v787_v25  ;;  %v786_v29 = vadd.f32 %v975_v18, %v777_v27 }
 0x35f   : > { %798 = vst.msk [vmem:[%s283_s13] sm:$0xf] %vm797_vm7, %v983_v28  ;;  %v788_v30 = vmax.f32 %v786_v29, 0.0 }
 0x361   : > { %v984_v31 = vpack.c.bf16 %v788_v30, %v788_v30 }
 0x363   : > { %799 = vst.msk [vmem:[%s283_s13 + $0x4] sm:$0xf] %vm797_vm7, %v984_v31 }
 0x364   : > { %1167 = shalt.err (!%p1164_p5)
}
 0x365   : > { %s1168_s7 = scalar_lea.hbm %s1513_s17, 128  ;;  %s1172_s10 = scalar_lea.hbm %s1568_s5, 256 }
 0x366   : > { %p1169_p6 = scmp.ne.s32.totalorder %s1513_s17, %s1168_s7  ;;  %p1173_p10 = scmp.lt.u32.totalorder %s1513_s17, %s1568_s5 }
 0x367   : > { %p1174_p11 = scmp.lt.u32.totalorder %s1172_s10, %s1168_s7  ;;  %p1176_p13 = scmp.lt.u32.totalorder %s1168_s7, %s1513_s17 }
 0x368   : > { %p1170_p7 = pnand %p1169_p6, %p1313_p4 }
 0x369   : > { %p1175_p12 = por %p1174_p11, %p1173_p10 }
 0x36a   : > { %p1171_p9 = pneg %p1170_p7 }
 0x36b   : > { %p1177_p0 = por %p1176_p13, %p1175_p12 }
 0x36d   : > { %p1178_p1 = pnand %p1177_p0, %p1171_p9 }
 0x36f   : > { %1181 = shalt.err (!%p1178_p1)
}
 0x370   : > { %s1241_s13 = smov 64   ;;  %s1242_s15 = smov 4  }
 0x371   : > { %1048 = dma.vmem_to_hbm [thread:$0]  (%p1313_p4), %s1515_s14, 128, %s1513_s17, %s1517_s24, %s1241_s13, %s1241_s13, %s1242_s15  }
 0x372 PF: > { %p1054_p2 = scmp.ge.s32.totalorder %s1232_s23, 2  ;;  %s829_s16 = sand.u32 1, %s1212_s18  }
 0x373   : > { %s830_s25 = scalar_lea.sflag [#allocation6], %s829_s16 }
 0x374   : > { %p1051_p3 = pnand %p1054_p2, %p1320_p8 }
 0x376   : > { %1207 = dma.done.wait (!%p1051_p3), %s830_s25, 128  }
 0x377   : > { %1209 = vsyncadd (!%p1051_p3), %s830_s25, 4294967168  ;;  %s18_s23 = sadd.s32 1, %s1232_s23   ;;  %s1571_s18 = smov %s1216_s19 }
 0x378   : > { %p15_p5 = scmp.ge.s32.totalorder %s18_s23, 4   ;;  %s1572_s19 = smov %s1220_s20 }
 0x379   : > { %s1573_s20 = smov %s1326_s6  ;;  %s1574_s21 = smov %s1228_s22 }
 0x37a   : > { %s1575_s22 = smov %s1577_s26  ;;  %17 = sbr.rel (!%p15_p5) target bundleno = 4 (0x4), region = 96 }
 0x381   :  { %835 = vsyncpa [#allocation6], 1 }
 0x382   :  { %837 = vsyncpa [#allocation6 + $0x1], 1 }

</bundles_post_ra>
